<compile_context>
chip_gen: v7x
topology: tpu7x:2x2x1
jax: 0.10.0
libtpu: 0.0.40
codegen_flags: <defaults>
</compile_context>

<pallas_src>
import jax
import jax.numpy as jnp
from jax import lax
from jax.experimental import pallas as pl
from jax.experimental.pallas import tpu as pltpu

_LANES = 128


def _round_up(x, m):
    return ((x + m - 1) // m) * m


def _make_sumsq_kernel(valid_rows, row_tile, blocks_per_split, needs_mask):
    """Accumulate sum((p - t)^2) in a VMEM scratch, fold to (8,128) at the end."""

    def kernel(p_ref, t_ref, out_ref, acc_ref):
        c = pl.program_id(0)          # core-split index ("parallel")
        i = pl.program_id(1)          # reduction step   ("arbitrary")

        @pl.when(i == 0)
        def _init():
            acc_ref[...] = jnp.zeros_like(acc_ref)

        d = p_ref[...].astype(jnp.float32) - t_ref[...].astype(jnp.float32)
        sq = d * d

        if needs_mask:
            gblk = c * blocks_per_split + i
            block_end = (gblk + 1) * row_tile

            @pl.when(block_end <= valid_rows)
            def _full_block():
                acc_ref[...] += sq

            @pl.when(block_end > valid_rows)
            def _tail_block():
                # Only the block(s) that overrun the row count pay for the mask.
                row_ids = gblk * row_tile + lax.broadcasted_iota(
                    jnp.int32, sq.shape, 0)
                acc_ref[...] += jnp.where(row_ids < valid_rows, sq,
                                          jnp.float32(0.0))
        else:
            acc_ref[...] += sq

        @pl.when(i == pl.num_programs(1) - 1)
        def _fold():
            # (rt,128) -> (rt//8, 8, 128), sum leading axis: per-vreg VPU adds.
            folded = jnp.sum(acc_ref[...].reshape(row_tile // 8, 8, _LANES),
                             axis=0)
            out_ref[...] = folded.reshape(1, 8, _LANES)

    return kernel


def rmse_loss(predictions, targets, *, row_tile=4096, n_split=2):
    """sqrt(mean((predictions - targets)^2)) — matches nn.MSELoss + sqrt."""
    assert predictions.shape == targets.shape, "RMSELoss assumes matching shapes"
    n_elems = predictions.size

    p = predictions.reshape(-1)
    t = targets.reshape(-1)

    rows = n_elems // _LANES
    rem = n_elems - rows * _LANES

    # Ragged (<128 element) tail: tiny plain-JAX sum of squares, no jnp.pad copy.
    if rem:
        pt = p[rows * _LANES:].astype(jnp.float32)
        tt = t[rows * _LANES:].astype(jnp.float32)
        tail_ss = jnp.sum((pt - tt) * (pt - tt))
    else:
        tail_ss = jnp.float32(0.0)

    if rows == 0:
        # Whole input fits in the tail; nothing for the kernel to do.
        return jnp.sqrt(tail_ss / jnp.float32(n_elems))

    p2 = p[: rows * _LANES].reshape(rows, _LANES)
    t2 = t[: rows * _LANES].reshape(rows, _LANES)

    # Row tile: biggest that fits, rounded to the dtype's sublane packing.
    itemsize = jnp.dtype(predictions.dtype).itemsize
    pack = max(8, 32 // max(1, itemsize))       # f32->8, bf16->16, int8/fp8->32
    rt = _round_up(min(row_tile, rows), pack)

    num_blocks = pl.cdiv(rows, rt)
    ns = max(1, min(n_split, num_blocks))       # 2-way split only if >=2 blocks
    bpc = pl.cdiv(num_blocks, ns)
    total_blocks = ns * bpc
    needs_mask = (total_blocks * rt) > rows

    if total_blocks > num_blocks:
        # Odd split: clamp phantom block indices (their rows are fully masked).
        in_map = lambda c, i: (jnp.minimum(c * bpc + i, num_blocks - 1), 0)
    else:
        in_map = lambda c, i: (c * bpc + i, 0)

    kernel = _make_sumsq_kernel(rows, rt, bpc, needs_mask)

    # VMEM budget: 2 inputs x 2 buffers + f32 scratch accumulator + slack.
    in_block_bytes = rt * _LANES * itemsize
    acc_bytes = rt * _LANES * 4
    vmem_limit = max(int(4 * in_block_bytes + acc_bytes + (4 << 20)), 16 << 20)

    partials = pl.pallas_call(
        kernel,
        out_shape=jax.ShapeDtypeStruct((ns, 8, _LANES), jnp.float32),
        grid_spec=pltpu.PrefetchScalarGridSpec(
            num_scalar_prefetch=0,
            grid=(ns, bpc),
            in_specs=[
                pl.BlockSpec((rt, _LANES), in_map),
                pl.BlockSpec((rt, _LANES), in_map),
            ],
            out_specs=pl.BlockSpec((1, 8, _LANES), lambda c, i: (c, 0, 0)),
            scratch_shapes=[pltpu.VMEM((rt, _LANES), jnp.float32)],
        ),
        compiler_params=pltpu.CompilerParams(
            dimension_semantics=("parallel", "arbitrary"),
            vmem_limit_bytes=vmem_limit,
        ),
    )(p2, t2)

    # TODO(synk): on v7x consider row_tile=8192 and pl.Buffered(3) inputs if a
    # trace shows exposed DMA between steps.
    total_ss = jnp.sum(partials) + tail_ss
    return jnp.sqrt(total_ss / jnp.float32(n_elems))


if __name__ == "__main__":
    key = jax.random.PRNGKey(0)
    k1, k2, k3, k4, k5, k6 = jax.random.split(key, 6)

    # Small NCHW shapes consistent with a regression output.
    preds = jax.random.normal(k1, (2, 4, 16, 16), dtype=jnp.float32)
    targs = jax.random.normal(k2, (2, 4, 16, 16), dtype=jnp.float32)
    rmse = rmse_loss(preds, targs)
    jax.block_until_ready(rmse)
    ref = jnp.sqrt(jnp.mean((preds - targs) ** 2))
    assert jnp.allclose(rmse, ref, rtol=1e-5, atol=1e-6), (rmse, ref)

    # Ragged size (numel % 128 != 0): exercises the pad-free tail path.
    p_r = jax.random.normal(k3, (4, 8, 131), dtype=jnp.float32)
    t_r = jax.random.normal(k4, (4, 8, 131), dtype=jnp.float32)
    rmse_r = rmse_loss(p_r, t_r)
    jax.block_until_ready(rmse_r)
    ref_r = jnp.sqrt(jnp.mean((p_r - t_r) ** 2))
    assert jnp.allclose(rmse_r, ref_r, rtol=1e-5, atol=1e-6), (rmse_r, ref_r)

    # Rows not a multiple of 8: exercises the in-kernel masked tail block.
    p_m = jax.random.normal(k5, (5, 256), dtype=jnp.float32)
    t_m = jax.random.normal(k6, (5, 256), dtype=jnp.float32)
    rmse_m = rmse_loss(p_m, t_m)
    jax.block_until_ready(rmse_m)
    ref_m = jnp.sqrt(jnp.mean((p_m - t_m) ** 2))
    assert jnp.allclose(rmse_m, ref_m, rtol=1e-5, atol=1e-6), (rmse_m, ref_m)

    print("KERNEL_OK")
</pallas_src>

<mosaic_0001>
module attributes {stable_mosaic.version = 11 : i64} {
  func.func @kernel(%arg0: i32, %arg1: i32, %arg2: memref<16x128xf32, #tpu.memory_space<vmem>>, %arg3: memref<16x128xf32, #tpu.memory_space<vmem>>, %arg4: memref<1x8x128xf32, #tpu.memory_space<vmem>>, %arg5: memref<16x128xf32, #tpu.memory_space<vmem>>) attributes {dimension_semantics = [#tpu.dimension_semantics<parallel>, #tpu.dimension_semantics<arbitrary>], iteration_bounds = array<i64: 1, 1>, scalar_prefetch = 0 : i64, scratch_operands = 1 : i64, tpu.core_type = #tpu.core_type<tc>, window_params = [{transform_indices = @transform_0, window_bounds = array<i64: 16, 128>}, {transform_indices = @transform_1, window_bounds = array<i64: 16, 128>}, {transform_indices = @transform_2, window_bounds = array<i64: 1, 8, 128>}]} {
    %c0_i32 = arith.constant 0 : i32
    %0 = arith.cmpi eq, %arg1, %c0_i32 : i32
    %1 = arith.extui %0 : i1 to i32
    %c0_i32_0 = arith.constant 0 : i32
    %2 = arith.cmpi ne, %1, %c0_i32_0 : i32
    scf.if %2 {
      %cst = arith.constant 0.000000e+00 : f32
      %13 = vector.broadcast %cst : f32 to vector<16x128xf32>
      %c0_10 = arith.constant 0 : index
      %c0_11 = arith.constant 0 : index
      %14 = vector.load %arg5[%c0_10, %c0_11] : memref<16x128xf32, #tpu.memory_space<vmem>>, vector<16x128xf32>
      tpu.vector_store %arg5[%c0_10, %c0_11], %13 {strides = array<i32>} : memref<16x128xf32, #tpu.memory_space<vmem>>, vector<16x128xf32>,
    } else {
    }
    %c0 = arith.constant 0 : index
    %c0_1 = arith.constant 0 : index
    %3 = vector.load %arg2[%c0, %c0_1] : memref<16x128xf32, #tpu.memory_space<vmem>>, vector<16x128xf32>
    %c0_2 = arith.constant 0 : index
    %c0_3 = arith.constant 0 : index
    %4 = vector.load %arg3[%c0_2, %c0_3] : memref<16x128xf32, #tpu.memory_space<vmem>>, vector<16x128xf32>
    %5 = arith.subf %3, %4 : vector<16x128xf32>
    %6 = arith.mulf %5, %5 : vector<16x128xf32>
    %c0_4 = arith.constant 0 : index
    %c0_5 = arith.constant 0 : index
    %7 = vector.load %arg5[%c0_4, %c0_5] : memref<16x128xf32, #tpu.memory_space<vmem>>, vector<16x128xf32>
    %8 = arith.addf %7, %6 : vector<16x128xf32>
    %c0_6 = arith.constant 0 : index
    %c0_7 = arith.constant 0 : index
    %9 = vector.load %arg5[%c0_6, %c0_7] : memref<16x128xf32, #tpu.memory_space<vmem>>, vector<16x128xf32>
    tpu.vector_store %arg5[%c0_6, %c0_7], %8 {strides = array<i32>} : memref<16x128xf32, #tpu.memory_space<vmem>>, vector<16x128xf32>,
    %c0_i32_8 = arith.constant 0 : i32
    %10 = arith.cmpi eq, %arg1, %c0_i32_8 : i32
    %11 = arith.extui %10 : i1 to i32
    %c0_i32_9 = arith.constant 0 : i32
    %12 = arith.cmpi ne, %11, %c0_i32_9 : i32
    scf.if %12 {
      %c0_10 = arith.constant 0 : index
      %c0_11 = arith.constant 0 : index
      %13 = vector.load %arg5[%c0_10, %c0_11] : memref<16x128xf32, #tpu.memory_space<vmem>>, vector<16x128xf32>
      %14 = vector.shape_cast %13 : vector<16x128xf32> to vector<2x8x128xf32>
      %cst = arith.constant dense<0.000000e+00> : vector<8x128xf32>
      %15 = vector.multi_reduction <add>, %14, %cst [0] : vector<2x8x128xf32> to vector<8x128xf32>
      %16 = vector.shape_cast %15 : vector<8x128xf32> to vector<1x8x128xf32>
      %c0_12 = arith.constant 0 : index
      %c0_13 = arith.constant 0 : index
      %c0_14 = arith.constant 0 : index
      %17 = vector.load %arg4[%c0_12, %c0_13, %c0_14] : memref<1x8x128xf32, #tpu.memory_space<vmem>>, vector<1x8x128xf32>
      tpu.vector_store %arg4[%c0_12, %c0_13, %c0_14], %16 {strides = array<i32>} : memref<1x8x128xf32, #tpu.memory_space<vmem>>, vector<1x8x128xf32>,
    } else {
    }
    return
  }
  func.func @transform_0(%arg0: i32, %arg1: i32) -> (i32, i32) {
    %c1_i32 = arith.constant 1 : i32
    %0 = arith.muli %arg0, %c1_i32 : i32
    %1 = arith.addi %0, %arg1 : i32
    %c0_i32 = arith.constant 0 : i32
    %c0_i32_0 = arith.constant 0 : i32
    return %1, %c0_i32 : i32, i32
  }
  func.func @transform_1(%arg0: i32, %arg1: i32) -> (i32, i32) {
    %c1_i32 = arith.constant 1 : i32
    %0 = arith.muli %arg0, %c1_i32 : i32
    %1 = arith.addi %0, %arg1 : i32
    %c0_i32 = arith.constant 0 : i32
    %c0_i32_0 = arith.constant 0 : i32
    return %1, %c0_i32 : i32, i32
  }
  func.func @transform_2(%arg0: i32, %arg1: i32) -> (i32, i32, i32) {
    %c0_i32 = arith.constant 0 : i32
    %c0_i32_0 = arith.constant 0 : i32
    %c0_i32_1 = arith.constant 0 : i32
    return %arg0, %c0_i32, %c0_i32_0 : i32, i32, i32
  }
}

</mosaic_0001>

<bundles_post_ra>
// kernel: tpu_custom_call.1
= control target key start
LH: loop header
LB: loop body
LE: loop exit
PB: predicated region body
PF: predicated region fallthrough
CT: control target
= control target key end

     0   :  { %7 = vsyncpa [#allocation4], 0  ;;  %s228_s0 = inlined_call_operand.hbm [shape: f32[16,128], index: 0, kind: input, shape index: {}]   ;;  %s229_s1 = inlined_call_operand.hbm [shape: f32[16,128], index: 1, kind: input, shape index: {}]   ;;  %s230_s2 = inlined_call_operand.hbm [shape: f32[1,8,128], index: 2, kind: output, shape index: {}]  }
   0x1   :  { %8 = vsyncpa [#allocation7], 0 }
   0x2   :  { %9 = vsyncpa [#allocation5], 0  ;;  %s172_s9 = smov [#allocation3]   ;;  %s100_s13 = scalar_lea.hbm %s228_s0, 256 }
   0x3   :  { %s19_s10 = sshll.u32 %s172_s9, 4  ;;  %p101_p0 = scmp.ne.s32.totalorder %s228_s0, %s100_s13  ;;  %s20_s10 = int_to_ptr.vmem [resolvable:$true] %s19_s10 }
   0x4   :  { %p104_p1 = scmp.lt.u32.totalorder %s100_s13, %s228_s0 }
   0x6   :  { %p106_p2 = pnand %p104_p1, %p101_p0 }
   0x8   :  { %109 = shalt.err (!%p106_p2)
}
   0x9   :  { %s110_s18 = scalar_lea.vmem %s20_s10, 256  ;;  %p115_p4 = scmp.lt.s32.totalorder %s20_s10, %s20_s10 }
   0xa   :  { %p111_p3 = scmp.ne.s32.totalorder %s20_s10, %s110_s18  ;;  %p116_p5 = scmp.lt.s32.totalorder %s110_s18, %s110_s18 }
   0xc   :  { %p117_p6 = por %p116_p5, %p115_p4 }
   0xe   :  { %p118_p7 = pnand %p117_p6, %p111_p3 }
  0x10   :  { %121 = shalt.err (!%p118_p7)
}
  0x11   :  { %s173_s19 = smov 128   ;;  %s174_s20 = smov 8  }
  0x12   :  { %25 = dma.hbm_to_vmem [thread:$0]  %s228_s0, 256, %s20_s10, [#allocation4], %s173_s19, %s173_s19, %s174_s20  }
  0x13   :  { %s175_s23 = smov [#allocation6]   ;;  %s122_s27 = scalar_lea.hbm %s229_s1, 256 }
  0x14   :  { %s35_s24 = sshll.u32 %s175_s23, 4  ;;  %p123_p8 = scmp.ne.s32.totalorder %s229_s1, %s122_s27  ;;  %s36_s24 = int_to_ptr.vmem [resolvable:$true] %s35_s24 }
  0x15   :  { %p126_p9 = scmp.lt.u32.totalorder %s122_s27, %s229_s1 }
  0x17   :  { %p128_p10 = pnand %p126_p9, %p123_p8 }
  0x19   :  { %131 = shalt.err (!%p128_p10)
}
  0x1a   :  { %s132_s4 = scalar_lea.vmem %s36_s24, 256  ;;  %p137_p12 = scmp.lt.s32.totalorder %s36_s24, %s36_s24 }
  0x1b   :  { %p133_p11 = scmp.ne.s32.totalorder %s36_s24, %s132_s4  ;;  %p138_p13 = scmp.lt.s32.totalorder %s132_s4, %s132_s4 }
  0x1d   :  { %p139_p0 = por %p138_p13, %p137_p12 }
  0x1f   :  { %p140_p1 = pnand %p139_p0, %p133_p11 }
  0x21   :  { %143 = shalt.err (!%p140_p1)
}
  0x22   :  { %41 = dma.hbm_to_vmem [thread:$0]  %s229_s1, 256, %s36_s24, [#allocation7], %s173_s19, %s173_s19, %s174_s20  }
  0x23   :  { %166 = dma.done.wait [#allocation4], 256  }
  0x24   :  { %167 = vsyncadd [#allocation4], 4294967040 }
  0x25   :  { %168 = dma.done.wait [#allocation7], 256  }
  0x26   :  { %169 = vsyncadd [#allocation7], 4294967040  ;;  %v58_v0 = vld [vmem:[#allocation3] sm:$0xff]  ;;  %v59_v1 = vld [vmem:[#allocation3 + $0x8] sm:$0xff]  ;;  %s176_s6 = smov [#allocation8]  }
  0x27   :  { %v60_v2 = vld [vmem:[#allocation6] sm:$0xff]  ;;  %v61_v3 = vld [vmem:[#allocation6 + $0x8] sm:$0xff]  ;;  %s85_s7 = sshll.u32 %s176_s6, 4  ;;  %s86_s7 = int_to_ptr.vmem [resolvable:$true] %s85_s7 }
  0x28   :  { %v62_v4 = vsub.f32 %v58_v0, %v60_v2  ;;  %v63_v5 = vsub.f32 %v59_v1, %v61_v3  ;;  %s144_s8 = scalar_lea.vmem %s86_s7, 128  ;;  %p149_p3 = scmp.lt.s32.totalorder %s86_s7, %s86_s7 }
  0x29   :  { %p145_p2 = scmp.ne.s32.totalorder %s86_s7, %s144_s8  ;;  %p150_p4 = scmp.lt.s32.totalorder %s144_s8, %s144_s8 }
  0x2a   :  { %v64_v6 = vmul.f32 %v62_v4, %v62_v4  ;;  %v65_v7 = vmul.f32 %v63_v5, %v63_v5 }
  0x2b   :  { %p151_p5 = por %p150_p4, %p149_p3 }
  0x2c   :  { %v77_v8 = vadd.f32 %v65_v7, %v64_v6 }
  0x2d   :  { %p152_p6 = pnand %p151_p5, %p145_p2 }
  0x2e   :  { %78 = vst [vmem:[#allocation8] sm:$0xff] %v77_v8 }
  0x2f   :  { %155 = shalt.err (!%p152_p6)
}
  0x30   :  { %s156_s10 = scalar_lea.hbm %s230_s2, 128 }
  0x31   :  { %p157_p7 = scmp.ne.s32.totalorder %s230_s2, %s156_s10  ;;  %p160_p8 = scmp.lt.u32.totalorder %s156_s10, %s230_s2 }
  0x33   :  { %p162_p9 = pnand %p160_p8, %p157_p7 }
  0x35   :  { %165 = shalt.err (!%p162_p9)
}
  0x36   :  { %88 = dma.vmem_to_hbm [thread:$0]  %s86_s7, 128, %s230_s2, [#allocation5]  }
  0x37   :  { %170 = dma.done.wait [#allocation5], 128  }
  0x38   :  { %171 = vsyncadd [#allocation5], 4294967168 }
  0x39   :  { %92 = vsyncpa [#allocation4], 1 }
  0x3a   :  { %93 = vsyncpa [#allocation7], 1 }
  0x3b   :  { %94 = vsyncpa [#allocation5], 1 }

</bundles_post_ra>
